<compile_context>
chip_gen: v5e
topology: v5e:2x2
jax: 0.10.0
libtpu: 0.0.40
codegen_flags: <defaults>
</compile_context>

<pallas_src>
import math
from dataclasses import dataclass

import jax
import jax.numpy as jnp
from jax.experimental import pallas as pl
from jax.experimental.pallas import tpu as pltpu


@dataclass
class ModulationOut:
    shift: jax.Array
    scale: jax.Array
    gate: jax.Array


def _modulation_kernel(x_ref, w_ref, b_ref, o_ref):
    # SiLU in f32 (correct on all generations; v5e VPU/EUP have no bf16 path).
    # Per-tile recompute is B*dim work, fully hidden behind the weight DMA.
    x = x_ref[...].astype(jnp.float32)
    h = x * jax.nn.sigmoid(x)
    # MXU matmul: operands in the weight's dtype (bf16 recommended), f32 acc.
    # Note: the activation is quantized to the weight dtype before the MXU,
    # so both operands are bf16 relative to the f32 PyTorch reference.
    y = jnp.dot(h.astype(w_ref.dtype), w_ref[...],
                preferred_element_type=jnp.float32)
    y = y + b_ref[...].astype(jnp.float32)
    o_ref[...] = y.astype(o_ref.dtype)


def _round_up(x: int, m: int) -> int:
    return ((x + m - 1) // m) * m


def _vmem_budget_bytes() -> int:
    """~75% of physical VMEM (~48 MiB on v7x, ~96 MiB on v5e/v6e)."""
    try:
        cap = pltpu.get_tpu_info().vmem_capacity_bytes
    except Exception:
        cap = 64 << 20  # conservative fallback (v7x physical VMEM)
    return int(cap * 3 // 4)


def _select_tile_n(n_pad: int, dim: int, bp: int,
                   w_isz: int, in_isz: int, out_isz: int):
    """Budget-aware output-column tile.  Returns (TN, grid, vmem_limit_bytes)."""
    headroom = 4 << 20
    budget = _vmem_budget_bytes()
    # Bytes that scale with TN: double-buffered weight, output and bias tiles.
    per_tn = 2 * dim * w_isz + 2 * bp * out_isz + 2 * 4
    # Bytes independent of TN: resident (double-buffered) x block + headroom.
    fixed = 2 * bp * dim * in_isz + headroom
    tn_budget = max(128, ((budget - fixed) // per_tn) // 128 * 128)

    # Keep >= 2 column tiles when possible so v7x megacore shards the weight
    # stream across both TensorCores (no-op on v5e/v6e, negligible overhead).
    cap = n_pad
    if n_pad >= 256:
        cap = max(128, (n_pad // 2) // 128 * 128)
    tn_cap = min(tn_budget, cap)

    # Prefer the largest multiple-of-128 divisor of n_pad (no partial tile).
    best = 128
    for tn in range(tn_cap, 127, -128):
        if n_pad % tn == 0:
            best = tn
            break
    if best * 2 >= tn_cap:
        tn, grid = best, n_pad // best
    else:
        # Awkward N: fixed bounded tile + cdiv grid (Pallas masks the edge).
        tn, grid = tn_cap, pl.cdiv(n_pad, tn_cap)

    need = fixed + per_tn * tn
    return tn, grid, int(max(need, 16 << 20))


def modulation_forward(vec, w_t, b, *, double: bool):
    """vec: (B, dim); w_t: (dim, multiplier*dim) -- pass pre-cast (e.g. bf16)
    so the hot path never converts the dominant weight stream; b: (mult*dim,)."""
    B, dim = vec.shape
    multiplier = 6 if double else 3
    N = multiplier * dim
    assert w_t.shape == (dim, N)
    assert b.shape == (N,)

    # Pad batch to a sublane multiple (8) for full-vreg output stores.
    Bp = _round_up(B, 8)
    vec_p = vec if Bp == B else jnp.pad(vec, ((0, Bp - B), (0, 0)))

    # Lane-align N.  Production dims (multiples of 128) take the no-op branch;
    # only tiny/awkward dims pay this (small) pad.
    N_pad = _round_up(N, 128)
    w_p = w_t if N_pad == N else jnp.pad(w_t, ((0, 0), (0, N_pad - N)))
    b2 = b.astype(jnp.float32).reshape(1, N)
    if N_pad != N:
        b2 = jnp.pad(b2, ((0, 0), (0, N_pad - N)))

    w_isz = jnp.dtype(w_p.dtype).itemsize
    in_isz = jnp.dtype(vec.dtype).itemsize
    out_dtype = vec.dtype
    out_isz = jnp.dtype(out_dtype).itemsize

    TN, n_tiles, vmem_limit = _select_tile_n(N_pad, dim, Bp,
                                             w_isz, in_isz, out_isz)

    cost = pl.CostEstimate(
        flops=2 * Bp * dim * N_pad,
        transcendentals=Bp * dim * n_tiles,          # sigmoid recompute per tile
        bytes_accessed=(dim * N_pad * w_isz          # weight stream (dominant)
                        + Bp * dim * in_isz          # x
                        + Bp * N_pad * out_isz       # out
                        + N_pad * 4),                # bias
    )

    out = pl.pallas_call(
        _modulation_kernel,
        out_shape=jax.ShapeDtypeStruct((Bp, N_pad), out_dtype),
        grid=(n_tiles,),
        in_specs=[
            pl.BlockSpec((Bp, dim), lambda j: (0, 0)),   # x: resident, reused
            pl.BlockSpec((dim, TN), lambda j: (0, j)),   # weight: streamed
            pl.BlockSpec((1, TN), lambda j: (0, j)),     # bias: streamed
        ],
        out_specs=pl.BlockSpec((Bp, TN), lambda j: (0, j)),
        compiler_params=pltpu.CompilerParams(
            dimension_semantics=("parallel",),           # megacore-shard N tiles
            vmem_limit_bytes=vmem_limit),
        cost_estimate=cost,
    )(vec_p, w_p, b2)

    out = out[:B, :N]                                    # drop batch / lane pad
    # [:, None, :] + chunk(multiplier, -1)  ==  reshape-based view slicing.
    out = out.reshape(B, multiplier, 1, dim)
    chunks = [out[:, i] for i in range(multiplier)]      # each (B, 1, dim)
    first = ModulationOut(*chunks[:3])
    second = ModulationOut(*chunks[3:]) if double else None
    return first, second


def init_params(key, dim: int, double: bool, *, weight_dtype=jnp.bfloat16):
    """nn.Linear-style init (uniform +-1/sqrt(dim)); the f32->bf16 weight cast
    happens HERE, once, so the per-call hot path never converts the weight."""
    multiplier = 6 if double else 3
    kw, kb = jax.random.split(key)
    bound = 1.0 / math.sqrt(dim)
    # torch weight is (out, in); store transposed (in, out) for the kernel.
    w_t = jax.random.uniform(kw, (dim, multiplier * dim), jnp.float32,
                             minval=-bound, maxval=bound).astype(weight_dtype)
    b = jax.random.uniform(kb, (multiplier * dim,), jnp.float32,
                           minval=-bound, maxval=bound)
    return w_t, b


if __name__ == "__main__":
    key = jax.random.PRNGKey(0)
    k_in, k_param = jax.random.split(key)

    B, dim = 8, 32
    double = True

    vec = jax.random.normal(k_in, (B, dim), jnp.float32)
    w_t, b = init_params(k_param, dim, double)            # bf16 weight at init

    mod1, mod2 = modulation_forward(vec, w_t, b, double=double)
    jax.block_until_ready(mod1.shift)
    jax.block_until_ready(mod1.scale)
    jax.block_until_ready(mod1.gate)
    if mod2 is not None:
        jax.block_until_ready(mod2.gate)

    # Pure-JAX reference (bf16 weight, f32 math elsewhere) -> relaxed tol for
    # the in-kernel bf16 activation quantization.
    h = jax.nn.silu(vec)
    ref = (h @ w_t.astype(jnp.float32) + b)[:, None, :]
    ref_chunks = [ref[..., i * dim:(i + 1) * dim] for i in range(6)]
    tol = dict(atol=2e-2, rtol=2e-2)
    assert jnp.allclose(mod1.shift, ref_chunks[0], **tol)
    assert jnp.allclose(mod1.scale, ref_chunks[1], **tol)
    assert jnp.allclose(mod1.gate, ref_chunks[2], **tol)
    assert mod2 is not None
    assert jnp.allclose(mod2.shift, ref_chunks[3], **tol)
    assert jnp.allclose(mod2.scale, ref_chunks[4], **tol)
    assert jnp.allclose(mod2.gate, ref_chunks[5], **tol)
    assert mod1.shift.shape == (B, 1, dim)

    print("KERNEL_OK")
</pallas_src>

<mosaic_0001>
module attributes {stable_mosaic.version = 11 : i64} {
  func.func @_modulation_kernel(%arg0: i32, %arg1: memref<8x32xf32, #tpu.memory_space<vmem>>, %arg2: memref<32x128xbf16, #tpu.memory_space<vmem>>, %arg3: memref<1x128xf32, #tpu.memory_space<vmem>>, %arg4: memref<8x128xf32, #tpu.memory_space<vmem>>) attributes {dimension_semantics = [#tpu.dimension_semantics<parallel>], iteration_bounds = array<i64: 2>, scalar_prefetch = 0 : i64, scratch_operands = 0 : i64, tpu.core_type = #tpu.core_type<tc>, window_params = [{pipeline_mode = #tpu.pipeline_mode<synchronous>, transform_indices = @transform_0, window_bounds = array<i64: 8, 32>}, {transform_indices = @transform_1, window_bounds = array<i64: 32, 128>}, {transform_indices = @transform_2, window_bounds = array<i64: 1, 128>}, {transform_indices = @transform_3, window_bounds = array<i64: 8, 128>}]} {
    %c0 = arith.constant 0 : index
    %c0_0 = arith.constant 0 : index
    %0 = vector.load %arg1[%c0, %c0_0] : memref<8x32xf32, #tpu.memory_space<vmem>>, vector<8x32xf32>
    %1 = arith.negf %0 : vector<8x32xf32>
    %2 = math.exp %1 : vector<8x32xf32>
    %cst = arith.constant 1.000000e+00 : f32
    %3 = vector.broadcast %cst : f32 to vector<8x32xf32>
    %4 = arith.addf %3, %2 : vector<8x32xf32>
    %5 = arith.divf %3, %4 : vector<8x32xf32>
    %6 = arith.mulf %0, %5 : vector<8x32xf32>
    %7 = arith.truncf %6 : vector<8x32xf32> to vector<8x32xbf16>
    %c0_1 = arith.constant 0 : index
    %c0_2 = arith.constant 0 : index
    %8 = vector.load %arg2[%c0_1, %c0_2] : memref<32x128xbf16, #tpu.memory_space<vmem>>, vector<32x128xbf16>
    %cst_3 = arith.constant dense<0.000000e+00> : vector<8x128xf32>
    %9 = tpu.matmul %7, %8, %cst_3 {dimension_numbers = #tpu.dot_dimension_numbers<[1], [0], [0], [1], [0, 0, 1, 1], [], []>} : vector<8x32xbf16>, vector<32x128xbf16>, vector<8x128xf32> -> vector<8x128xf32>
    %c0_4 = arith.constant 0 : index
    %c0_5 = arith.constant 0 : index
    %10 = vector.load %arg3[%c0_4, %c0_5] : memref<1x128xf32, #tpu.memory_space<vmem>>, vector<1x128xf32>
    %11 = vector.broadcast %10 : vector<1x128xf32> to vector<8x128xf32>
    %12 = arith.addf %9, %11 : vector<8x128xf32>
    %c0_6 = arith.constant 0 : index
    %c0_7 = arith.constant 0 : index
    %13 = vector.load %arg4[%c0_6, %c0_7] : memref<8x128xf32, #tpu.memory_space<vmem>>, vector<8x128xf32>
    tpu.vector_store %arg4[%c0_6, %c0_7], %12 {strides = array<i32>} : memref<8x128xf32, #tpu.memory_space<vmem>>, vector<8x128xf32>,
    return
  }
  func.func @transform_0(%arg0: i32) -> (i32, i32) {
    %c0_i32 = arith.constant 0 : i32
    %c0_i32_0 = arith.constant 0 : i32
    %c0_i32_1 = arith.constant 0 : i32
    return %c0_i32, %c0_i32_0 : i32, i32
  }
  func.func @transform_1(%arg0: i32) -> (i32, i32) {
    %c0_i32 = arith.constant 0 : i32
    %c0_i32_0 = arith.constant 0 : i32
    return %c0_i32, %arg0 : i32, i32
  }
  func.func @transform_2(%arg0: i32) -> (i32, i32) {
    %c0_i32 = arith.constant 0 : i32
    %c0_i32_0 = arith.constant 0 : i32
    return %c0_i32, %arg0 : i32, i32
  }
  func.func @transform_3(%arg0: i32) -> (i32, i32) {
    %c0_i32 = arith.constant 0 : i32
    %c0_i32_0 = arith.constant 0 : i32
    return %c0_i32, %arg0 : i32, i32
  }
}

</mosaic_0001>

<bundles_post_ra>
// kernel: tpu_custom_call.1
= control target key start
LH: loop header
LB: loop body
LE: loop exit
PB: predicated region body
PF: predicated region fallthrough
CT: control target
= control target key end

     0   :  { %8 = vsyncpa [#allocation3], 0  ;;  %s869_s0 = inlined_call_operand.hbm [shape: f32[8,32], index: 0, kind: input, shape index: {}]   ;;  %s870_s1 = inlined_call_operand.hbm [shape: bf16[32,256], index: 1, kind: input, shape index: {}]   ;;  %s871_s2 = inlined_call_operand.hbm [shape: f32[1,256], index: 2, kind: input, shape index: {}]   ;;  %s872_s3 = inlined_call_operand.hbm [shape: f32[8,256], index: 3, kind: output, shape index: {}]  }
   0x1   :  { %9 = vsyncpa [#allocation6], 0 }
   0x2   :  { %11 = vsyncpa [#allocation6 + $0x1], 0 }
   0x3   :  { %12 = vsyncpa [#allocation4], 0 }
   0x4   :  { %14 = vsyncpa [#allocation4 + $0x1], 0  ;;  %s694_s12 = smov 0   ;;  %s696_s13 = smov 0  }
   0x5   :  { %s698_s14 = smov 0   ;;  %s700_s15 = smov 0  }
   0x6 LB: > { %s715_s16 = sadd.s32 1, %s668_s15   ;;  %s48_s17 = sadd.s32 1, %s664_s14  ;;  %s668_s15 = sphi %s700_s15, %s885_s15   ;;  %s664_s14 = sphi %s698_s14, %s884_s14   ;;  %s660_s13 = sphi %s696_s13, %s883_s13   ;;  %s656_s12 = sphi %s694_s12, %s882_s12  }
   0x7   : > { %s45_s18 = ssub.s32 %s668_s15, %s715_s16  ;;  %p55_p0 = scmp.ne.s32.totalorder %s664_s14, %s660_s13 }
   0x8   : > { %p46_p1 = scmp.eq.s32.totalorder %s45_s18, 0  ;;  %p56_p2 = scmp.eq.s32.totalorder %s668_s15, 0 }
   0x9   : > { %p464_p4 = scmp.lt.s32.totalorder %s668_s15, 2  ;;  %s149_s20 = sand.u32 1, %s668_s15  }
   0xa   : > { %s726_s19 = scalar_select %p46_p1, %s664_s14, %s48_s17  }
   0xb   : > { %p57_p5 = por %p56_p2, %p55_p0  ;;  %s151_s21 = sand.u32 1, %s664_s14  }
   0xc   : > { %s416_s22 = sshll.u32 %s151_s21, 4  ;;  %s417_s23 = sshll.u32 %s668_s15, 2 }
   0xd   : > { %s157_s26 = scalar_lea.hbm %s870_s1, %s417_s23  ;;  %s153_s28 = scalar_lea.vmem [#allocation5], %s416_s22 }
   0xe   : > { %s158_s27 = sshll.u32 %s157_s26, 4  ;;  %s160_s29 = sshll.u32 %s153_s28, 4  ;;  %s159_s27 = int_to_ptr.hbm [resolvable:$true] %s158_s27  ;;  %s161_s29 = int_to_ptr.vmem [resolvable:$true] %s160_s29 }
   0xf   : > { %p741_p6 = pnand %p464_p4, %p57_p5  ;;  %s745_s4 = scalar_lea.sflag [#allocation6], %s149_s20 }
  0x10   : > { %s508_s5 = sshra.s32 %s159_s27, 4  ;;  %s515_s9 = scalar_lea.hbm %s870_s1, 32  ;;  %s509_s5 = int_to_ptr.hbm [resolvable:$true] %s508_s5 }
  0x11   : > { %s510_s6 = scalar_lea.hbm %s509_s5, 16  ;;  %p512_p8 = pneg %p741_p6 }
  0x12   : > { %p511_p7 = scmp.ne.s32.totalorder %s509_s5, %s510_s6  ;;  %p516_p11 = scmp.lt.s32.totalorder %s509_s5, %s870_s1 }
  0x13   : > { %p517_p12 = scmp.lt.s32.totalorder %s515_s9, %s510_s6 }
  0x14   : > { %p513_p9 = pnand %p512_p8, %p511_p7 }
  0x15   : > { %p518_p13 = por %p517_p12, %p516_p11 }
  0x16   : > { %p514_p10 = pneg %p513_p9 }
  0x18   : > { %p519_p1 = pnand %p518_p13, %p514_p10 }
  0x1a   : > { %522 = shalt.err (!%p519_p1)
}
  0x1b   : > { %s670_s17 = smov 128   ;;  %s671_s18 = smov 64  }
  0x1c   : > { %s672_s20 = smov 4   ;;  %s762_s22 = sadd.s32 4294967295, %s668_s15  }
  0x1d   : > { %455 = dma.hbm_to_vmem [thread:$0]  (!%p741_p6), %s159_s27, 256, %s161_s29, %s745_s4, %s670_s17, %s671_s18, %s672_s20  }
  0x1e   : > { %s412_s23 = sadd.s32 4294967294, %s668_s15   ;;  %p61_p2 = scmp.ne.s32.totalorder %s660_s13, %s656_s12 }
  0x1f   : > { %p873_p4 = scmp.eq.s32.totalorder %s762_s22, 0  ;;  %p111_p5 = scmp.eq.s32.totalorder %s762_s22, 1 }
  0x20   : > { %p117_p7 = scmp.eq.s32.totalorder %s412_s23, 1  ;;  %p413_p9 = scmp.ge.s32.totalorder %s668_s15, 1 }
  0x21   : > { %p772_p10 = por %p873_p4, %p61_p2  ;;  %p779_p11 = por %p111_p5, %p55_p0 }
  0x22   : > { %p783_p12 = por %p117_p7, %p61_p2  ;;  %p124_p13 = scmp.lt.s32.totalorder %s668_s15, 3 }
  0x23   : > { %s136_s29 = sshll.u32 %s869_s0, 4  ;;  %s673_s6 = smov [#allocation2]   ;;  %s137_s29 = int_to_ptr.hbm [resolvable:$true] %s136_s29 }
  0x24   : > { %p791_p1 = pnand %p413_p9, %p124_p13  ;;  %s138_s7 = sshll.u32 %s673_s6, 4  ;;  %s139_s7 = int_to_ptr.vmem [resolvable:$true] %s138_s7 }
  0x25   : > { %s176_s10 = scalar_lea.hbm %s871_s2, %s668_s15  ;;  %s173_s17 = scalar_lea.vmem [#allocation7], %s151_s21 }
  0x26   : > { %p448_p0 = pneg %p791_p1  ;;  %s178_s11 = sshll.u32 %s176_s10, 4  ;;  %s179_s11 = int_to_ptr.hbm [resolvable:$true] %s178_s11 }
  0x27   : > { %s180_s18 = sshll.u32 %s173_s17, 4  ;;  %s568_s20 = sshra.s32 %s179_s11, 4  ;;  %s181_s18 = int_to_ptr.vmem [resolvable:$true] %s180_s18  ;;  %s569_s20 = int_to_ptr.hbm [resolvable:$true] %s568_s20 }
  0x28   : > { %p449_p2 = pnand %p448_p0, %p873_p4  ;;  %s570_s23 = scalar_lea.hbm %s569_s20, 1 }
  0x29   : > { %p571_p5 = scmp.ne.s32.totalorder %s569_s20, %s570_s23  ;;  %s575_s6 = scalar_lea.hbm %s871_s2, 2 }
  0x2a   : > { %451 = dma.hbm_to_vmem [thread:$0]  (!%p449_p2), %s137_s29, 128, %s139_s7, [#allocation3]  }
  0x2b   : > { %p573_p7 = pnand %p571_p5, %p512_p8  ;;  %p576_p13 = scmp.lt.s32.totalorder %s569_s20, %s871_s2 }
  0x2c   : > { %p577_p0 = scmp.lt.s32.totalorder %s575_s6, %s570_s23 }
  0x2d   : > { %p574_p9 = pneg %p573_p7 }
  0x2e   : > { %p578_p3 = por %p577_p0, %p576_p13 }
  0x30   : > { %p579_p4 = pnand %p578_p3, %p574_p9 }
  0x32   : > { %582 = shalt.err (!%p579_p4)
}
  0x33   : > { %458 = dma.hbm_to_vmem [thread:$0]  (!%p741_p6), %s179_s11, 16, %s181_s18, %s745_s4  }
  0x34   : > { %189 = sbr.rel (%p791_p1) target bundleno = 230 (0xe6), region = 32  ;;  %p879_p8 = scmp.eq.s32.totalorder (!%p791_p1), %s762_s22, 0 }
  0x39   : > { %643 = dma.done.wait (%p879_p8), [#allocation3], 128   ;;  %p880_p2 = pmov %p879_p8 }
  0x3a   : > { %s196_s21 = sand.u32 1, %s762_s22   ;;  %s825_s29 = sand.u32 1, %s660_s13  }
  0x3b   : > { %645 = vsyncadd (%p880_p2), [#allocation3], 4294967168  ;;  %s420_s7 = sshll.u32 %s825_s29, 4  ;;  %s197_s30 = scalar_lea.sflag [#allocation6], %s196_s21 }
  0x3c   : > { %s200_s10 = scalar_lea.vmem [#allocation5], %s420_s7 }
  0x3d   : > { %647 = dma.done.wait (%p772_p10), %s197_s30, 272  }
  0x3e   : > { %649 = vsyncadd (%p772_p10), %s197_s30, 4294967024  ;;  %v437_v0 = vld [vmem:[%s200_s10 + $0x8] sm:$0xff]  ;;  %s209_s4 = scalar_lea.vmem [#allocation7], %s825_s29  ;;  %v436_v3 = vld [vmem:[%s200_s10] sm:$0xff]  ;;  %vm280_vm4 = vcmask 261120   ;;  %s433_s24 = sshll.u32 %s762_s22, 3 }
  0x3f   : > { %v238_v1 = vld [vmem:[#allocation2] sm:$0xff]  ;;  %290 = vmatpush.bf16.msra.mxu0 %v437_v0  ;;  %s421_s5 = sshll.u32 %s825_s29, 3  ;;  %s309_s18 = scalar_lea.hbm %s872_s3, %s433_s24 }
  0x40   : > { %v422_v2 = vmul.f32 -1.442695, %v238_v1  ;;  %v503_v18 = vld [vmem:[%s209_s4] ss:$0 sm:$0xff]  ;;  %s236_s20 = scalar_lea.vmem [#allocation8], %s421_s5  ;;  %s313_s27 = sshll.u32 %s309_s18, 4  ;;  %s314_s27 = int_to_ptr.hbm [resolvable:$true] %s313_s27 }
  0x41   : > { %s311_s23 = sshll.u32 %s236_s20, 4  ;;  %s299_s28 = scalar_lea.sflag [#allocation4], %s825_s29  ;;  %s312_s23 = int_to_ptr.vmem [resolvable:$true] %s311_s23 }
  0x42   : > { %504 = vpow2.f32 %v422_v2  ;;  %s612_s6 = sshra.s32 %s314_s27, 4  ;;  %s618_s21 = scalar_lea.hbm %s872_s3, 16  ;;  %s613_s6 = int_to_ptr.hbm [resolvable:$true] %s612_s6 }
  0x43   : > { %291 = vmatpush.bf16.msra.mxu0 %v436_v3  ;;  %s614_s22 = scalar_lea.hbm %s613_s6, 8  ;;  %p619_p10 = scmp.lt.s32.totalorder %s613_s6, %s872_s3 }
  0x44   : > { %p615_p3 = scmp.ne.s32.totalorder %s613_s6, %s614_s22  ;;  %p620_p1 = scmp.lt.s32.totalorder %s618_s21, %s614_s22 }
  0x46   : > { %p616_p6 = pnand %p615_p3, %p779_p11  ;;  %p621_p5 = por %p620_p1, %p619_p10 }
  0x48   : > { %v505_v4 = vpop.eup %504  ;;  %p617_p4 = pneg %p616_p6 }
  0x49   : > { %v242_v5 = vadd.f32 1.0, %v505_v4 }
  0x4a   : > { %p622_p7 = pnand %p621_p5, %p617_p4 }
  0x4b   : > { %506 = vrcp.f32 %v242_v5  ;;  %v254_v8 = vand.u32 2147483648, %v242_v5  ;;  %vm248_vm0 = vweird.f32 %v242_v5  ;;  %v252_v10 = vand.u32 2147483647, %v242_v5 }
  0x4d   : > { %v255_v12 = vor.u32 1.1754944e-38, %v254_v8  ;;  %vm253_vm3 = vcmp.eq.f32.partialorder %v252_v10, 8.507059e+37 }
  0x51   : > { %v507_v6 = vpop.eup %506 }
  0x52   : > { %v244_v7 = vmul.f32 %v507_v6, %v242_v5  ;;  %vm249_vm1 = vweird.f32 %v507_v6 }
  0x53   : > { %vm250_vm2 = vmor %vm248_vm0, %vm249_vm1 }
  0x54   : > { %v245_v9 = vsub.f32 1.0, %v244_v7 }
  0x56   : > { %v246_v11 = vmul.f32 %v507_v6, %v245_v9 }
  0x58   : > { %v247_v13 = vadd.f32 %v507_v6, %v246_v11 }
  0x5a   : > { %v251_v14 = vsel %vm250_vm2, %v507_v6, %v247_v13 }
  0x5b   : > { %v256_v15 = vsel %vm253_vm3, %v255_v12, %v251_v14 }
  0x5c   : > { %v258_v16 = vmul.f32 %v256_v15, %v238_v1 }
  0x5e   : > { %v259_v17 = vpack.c.bf16 %v258_v16, %v258_v16 }
  0x60   : > { %431 = vmatmul.msk.bf16.vlgmr.msra.gmra.mxu0 %vm280_vm4, %v259_v17 }
  0xdd   : > { %v293_v19 = vpop.f32.mrf.mxu0 }
  0xde   : > { %v294_v20 = vadd.f32 %v503_v18, %v293_v19 }
  0xe0   : > { %297 = vst [vmem:[%s236_s20] sm:$0xff] %v294_v20 }
  0xe1   : > { %625 = shalt.err (!%p622_p7)
}
  0xe2   : > { %446 = dma.vmem_to_hbm [thread:$0]  (%p779_p11), %s312_s23, 128, %s314_s27, %s299_s28  }
  0xe5   : > { %v295_v21 = vpop.f32.mrf.mxu0 }
  0xe6 PF: > { %s325_s29 = sand.u32 1, %s656_s12   ;;  %p881_p9 = scmp.ge.s32.totalorder %s668_s15, 2 }
  0xe7   : > { %s326_s10 = scalar_lea.sflag [#allocation4], %s325_s29 }
  0xe8   : > { %p460_p13 = pnand %p881_p9, %p783_p12 }
  0xea   : > { %p461_p0 = pneg %p460_p13 }
  0xec   : > { %651 = dma.done.wait (%p461_p0), %s326_s10, 128  }
  0xed   : > { %653 = vsyncadd (%p461_p0), %s326_s10, 4294967168  ;;  %p17_p8 = scmp.ge.s32.totalorder %s715_s16, 4   ;;  %s882_s12 = smov %s660_s13 }
  0xee   : > { %s883_s13 = smov %s664_s14  ;;  %s884_s14 = smov %s726_s19 }
  0xef   : > { %s885_s15 = smov %s715_s16  ;;  %19 = sbr.rel (!%p17_p8) target bundleno = 6 (0x6), region = 93 }
  0xf4   :  { %332 = vsyncpa [#allocation3], 1 }
  0xf5   :  { %334 = vsyncpa [#allocation3 + $0x1], 1 }
  0xf6   :  { %335 = vsyncpa [#allocation6], 1 }
  0xf7   :  { %337 = vsyncpa [#allocation6 + $0x1], 1 }
  0xf8   :  { %338 = vsyncpa [#allocation4], 1 }
  0xf9   :  { %340 = vsyncpa [#allocation4 + $0x1], 1 }

</bundles_post_ra>
